<compile_context>
chip_gen: v6e
topology: v6e:2x2x1
jax: 0.10.0
libtpu: 0.0.40
codegen_flags: <defaults>
</compile_context>

<pallas_src>
import functools

import jax
import jax.numpy as jnp
from jax.experimental import pallas as pl
from jax.experimental.pallas import tpu as pltpu


def _round_up(x, m):
    return ((x + m - 1) // m) * m


def _ib_probe_kernel(h_ref, noise_ref, wmu_ref, bmu_ref, wsig_ref, bsig_ref,
                     wdec_ref, bdec_ref, pred_ref, kld_ref, *, matmul_dtype):
    """One row-tile: encoder -> KL -> reparam sample -> decoder -> log_softmax."""
    h = h_ref[...].astype(matmul_dtype)                       # (T, D)
    noise = noise_ref[...].astype(jnp.float32)                # (T, D)

    # Bottleneck Linear(D, 2D), done as two D->D dots (mu / logsig halves)
    # so we never slice the projection at a lane offset.
    mus = jnp.dot(h, wmu_ref[...].astype(matmul_dtype),
                  preferred_element_type=jnp.float32)
    mus = mus + bmu_ref[...].astype(jnp.float32)              # (T, D)
    logsigs = jnp.dot(h, wsig_ref[...].astype(matmul_dtype),
                      preferred_element_type=jnp.float32)
    logsigs = logsigs + bsig_ref[...].astype(jnp.float32)     # (T, D)

    # kld = 0.5 * (exp(logsig) + mu^2 - 1 - logsig).sum(-1)
    # (kept as a (T, 1) block: the write is tiny relative to input traffic)
    kld_ref[...] = 0.5 * jnp.sum(
        jnp.exp(logsigs) + mus * mus - 1.0 - logsigs,
        axis=-1, keepdims=True)                               # (T, 1)

    # Reparameterized sample: mu + eps * exp(0.5 * logsig)
    sample = mus + noise * jnp.exp(0.5 * logsigs)             # (T, D)

    # Decoder (POSProbe): Linear(D, V) followed by log_softmax over V.
    logits = jnp.dot(sample.astype(matmul_dtype),
                     wdec_ref[...].astype(matmul_dtype),
                     preferred_element_type=jnp.float32)
    logits = logits + bdec_ref[...].astype(jnp.float32)       # (T, V)
    m = jnp.max(logits, axis=-1, keepdims=True)
    shifted = logits - m
    lse = jnp.log(jnp.sum(jnp.exp(shifted), axis=-1, keepdims=True))
    pred_ref[...] = (shifted - lse).astype(pred_ref.dtype)    # (T, V) log-probs


def ib_probe_forward(H, noise, w_enc_t, b_enc, w_dec_t, b_dec, *,
                     tile_rows=256, matmul_dtype=jnp.float32):
    """Pallas wrapper reproducing IBProbe.forward.

    Args:
        H:       (B, S, D) embeddings.
        noise:   (B, S, D) standard-normal noise (randn_like equivalent).
        w_enc_t: (D, 2D) encoder weight, transposed for x @ W^T form.
        b_enc:   (2D,)   encoder bias.
        w_dec_t: (D, V)  decoder weight, transposed.
        b_dec:   (V,)    decoder bias.
        tile_rows: rows per grid step (sweep 256/512/1024 on real shapes).
        matmul_dtype: dtype of MXU operands (jnp.bfloat16 on v6e/v7x trades a
            little precision for bandwidth/MXU throughput; f32 math elsewhere).
    Returns:
        prediction: (B, S, V) log-softmaxed logits (float32).
        kld:        (B, S)    per-token KL divergence (float32).
    """
    B, S, D = H.shape
    V = w_dec_t.shape[1]
    rows = B * S

    # Flatten to rows; do NOT force-cast here (avoids an extra HBM copy).
    h2d = H.reshape(rows, D)
    n2d = noise.reshape(rows, D)

    # Split encoder weight/bias into the mu / logsig halves once, outside the
    # kernel (tiny one-time op; removes a lane-offset slice per tile).
    w_mu_t = w_enc_t[:, :D]
    w_sig_t = w_enc_t[:, D:]
    b_mu = b_enc[:D].reshape(1, D)
    b_sig = b_enc[D:].reshape(1, D)
    b_dec2d = b_dec.reshape(1, V)

    # Large row tiles amortize per-grid-step overhead; pad rows with zeros so
    # the tile evenly divides the flattened row count (tail sliced off below).
    tile = min(_round_up(max(tile_rows, 8), 8), _round_up(rows, 8))
    padded_rows = _round_up(rows, tile)
    if padded_rows != rows:
        pad = padded_rows - rows
        h2d = jnp.pad(h2d, ((0, pad), (0, 0)))
        n2d = jnp.pad(n2d, ((0, pad), (0, 0)))
    grid = (padded_rows // tile,)

    # VMEM budget: double-buffered row tiles + outputs + resident weights,
    # padded to (8, 128) vreg tiles.  Raises v5e's 16 MiB scoped default when
    # needed without exceeding v7x's 64 MiB physical VMEM.
    def _buf_bytes(shape, dtype):
        sub = _round_up(shape[-2], 8)
        lane = _round_up(shape[-1], 128)
        return sub * lane * jnp.dtype(dtype).itemsize

    est = 2 * (_buf_bytes((tile, D), h2d.dtype)
               + _buf_bytes((tile, D), n2d.dtype)
               + _buf_bytes((tile, V), jnp.float32)
               + _buf_bytes((tile, 1), jnp.float32))
    est += 2 * (2 * _buf_bytes((D, D), w_mu_t.dtype)
                + 2 * _buf_bytes((1, D), b_mu.dtype)
                + _buf_bytes((D, V), w_dec_t.dtype)
                + _buf_bytes((1, V), b_dec2d.dtype))
    vmem_limit = int(min(max(2 * est, 32 * 1024 * 1024), 64 * 1024 * 1024))

    kernel = functools.partial(_ib_probe_kernel, matmul_dtype=matmul_dtype)

    pred, kld = pl.pallas_call(
        kernel,
        out_shape=(
            jax.ShapeDtypeStruct((padded_rows, V), jnp.float32),
            jax.ShapeDtypeStruct((padded_rows, 1), jnp.float32),
        ),
        grid_spec=pltpu.PrefetchScalarGridSpec(
            num_scalar_prefetch=0,
            grid=grid,
            in_specs=[
                pl.BlockSpec((tile, D), lambda i: (i, 0)),    # H rows
                pl.BlockSpec((tile, D), lambda i: (i, 0)),    # noise rows
                pl.BlockSpec((D, D), lambda i: (0, 0)),       # W_enc^T (mu half)
                pl.BlockSpec((1, D), lambda i: (0, 0)),       # b_enc   (mu half)
                pl.BlockSpec((D, D), lambda i: (0, 0)),       # W_enc^T (logsig half)
                pl.BlockSpec((1, D), lambda i: (0, 0)),       # b_enc   (logsig half)
                pl.BlockSpec((D, V), lambda i: (0, 0)),       # W_dec^T
                pl.BlockSpec((1, V), lambda i: (0, 0)),       # b_dec
            ],
            out_specs=[
                pl.BlockSpec((tile, V), lambda i: (i, 0)),    # prediction
                pl.BlockSpec((tile, 1), lambda i: (i, 0)),    # kld
            ],
        ),
        compiler_params=pltpu.CompilerParams(
            dimension_semantics=("parallel",),
            vmem_limit_bytes=vmem_limit),
    )(h2d, n2d, w_mu_t, b_mu, w_sig_t, b_sig, w_dec_t, b_dec2d)

    prediction = pred[:rows].reshape(B, S, V)
    kld = kld[:rows, 0].reshape(B, S)
    return prediction, kld


def _reference(H, noise, w_enc_t, b_enc, w_dec_t, b_dec):
    """Pure-JAX reference mirroring IBProbe.forward."""
    D = H.shape[-1]
    proj = jnp.einsum("bsd,de->bse", H, w_enc_t) + b_enc
    mus, logsigs = proj[..., :D], proj[..., D:]
    kld = 0.5 * jnp.sum(jnp.exp(logsigs) + mus ** 2 - 1.0 - logsigs, axis=2)
    sample = mus + noise * jnp.exp(0.5 * logsigs)
    logits = jnp.einsum("bsd,dv->bsv", sample, w_dec_t) + b_dec
    pred = jax.nn.log_softmax(logits, axis=-1)
    return pred, kld


if __name__ == "__main__":
    # Shapes consistent with the module: args['hidden_dim']=32,
    # pos_vocabsize=16, batch=2, max_slen=8.  A second, non-multiple-of-8
    # shape exercises the padding path.
    D, V = 32, 16
    key = jax.random.PRNGKey(0)
    k_we, k_be, k_wd, k_bd, k_data = jax.random.split(key, 5)

    # Deterministic parameter init mirroring nn.Linear shapes:
    #   Bottleneck.linear: weight (2D, D), bias (2D,)
    #   POSProbe.probe:    weight (V, D),  bias (V,)
    # Stored transposed for y = x @ W^T + b.
    w_enc_t = (jax.random.uniform(k_we, (D, 2 * D), minval=-1.0, maxval=1.0)
               / jnp.sqrt(D)).astype(jnp.float32)
    b_enc = (jax.random.uniform(k_be, (2 * D,), minval=-1.0, maxval=1.0)
             / jnp.sqrt(D)).astype(jnp.float32)
    w_dec_t = (jax.random.uniform(k_wd, (D, V), minval=-1.0, maxval=1.0)
               / jnp.sqrt(D)).astype(jnp.float32)
    b_dec = (jax.random.uniform(k_bd, (V,), minval=-1.0, maxval=1.0)
             / jnp.sqrt(D)).astype(jnp.float32)

    ok = True
    for (B, S) in [(2, 8), (3, 7)]:           # second case exercises padding
        k_h, k_noise, k_data = jax.random.split(k_data, 3)
        H = jax.random.normal(k_h, (B, S, D), dtype=jnp.float32)
        # torch.randn_like(logsigs) equivalent (deterministic here).
        noise = jax.random.normal(k_noise, (B, S, D), dtype=jnp.float32)

        prediction, kld = ib_probe_forward(H, noise, w_enc_t, b_enc,
                                           w_dec_t, b_dec)
        jax.block_until_ready((prediction, kld))

        pred_ref, kld_ref = _reference(H, noise, w_enc_t, b_enc, w_dec_t, b_dec)
        ok &= bool(jnp.allclose(prediction, pred_ref, atol=1e-5, rtol=1e-5))
        ok &= bool(jnp.allclose(kld, kld_ref, atol=1e-5, rtol=1e-5))

    assert ok, "Pallas IBProbe kernel does not match the JAX reference"
    print("KERNEL_OK")
</pallas_src>

<mosaic_0001>
module attributes {stable_mosaic.version = 11 : i64} {
  func.func @_ib_probe_kernel(%arg0: i32, %arg1: memref<16x32xf32, #tpu.memory_space<vmem>>, %arg2: memref<16x32xf32, #tpu.memory_space<vmem>>, %arg3: memref<32x32xf32, #tpu.memory_space<vmem>>, %arg4: memref<1x32xf32, #tpu.memory_space<vmem>>, %arg5: memref<32x32xf32, #tpu.memory_space<vmem>>, %arg6: memref<1x32xf32, #tpu.memory_space<vmem>>, %arg7: memref<32x16xf32, #tpu.memory_space<vmem>>, %arg8: memref<1x16xf32, #tpu.memory_space<vmem>>, %arg9: memref<16x16xf32, #tpu.memory_space<vmem>>, %arg10: memref<16x1xf32, #tpu.memory_space<vmem>>) attributes {dimension_semantics = [#tpu.dimension_semantics<parallel>], iteration_bounds = array<i64: 1>, scalar_prefetch = 0 : i64, scratch_operands = 0 : i64, tpu.core_type = #tpu.core_type<tc>, window_params = [{transform_indices = @transform_0, window_bounds = array<i64: 16, 32>}, {transform_indices = @transform_1, window_bounds = array<i64: 16, 32>}, {pipeline_mode = #tpu.pipeline_mode<synchronous>, transform_indices = @transform_2, window_bounds = array<i64: 32, 32>}, {pipeline_mode = #tpu.pipeline_mode<synchronous>, transform_indices = @transform_3, window_bounds = array<i64: 1, 32>}, {pipeline_mode = #tpu.pipeline_mode<synchronous>, transform_indices = @transform_4, window_bounds = array<i64: 32, 32>}, {pipeline_mode = #tpu.pipeline_mode<synchronous>, transform_indices = @transform_5, window_bounds = array<i64: 1, 32>}, {pipeline_mode = #tpu.pipeline_mode<synchronous>, transform_indices = @transform_6, window_bounds = array<i64: 32, 16>}, {pipeline_mode = #tpu.pipeline_mode<synchronous>, transform_indices = @transform_7, window_bounds = array<i64: 1, 16>}, {transform_indices = @transform_8, window_bounds = array<i64: 16, 16>}, {transform_indices = @transform_9, window_bounds = array<i64: 16, 1>}]} {
    %c0 = arith.constant 0 : index
    %c0_0 = arith.constant 0 : index
    %0 = vector.load %arg1[%c0, %c0_0] : memref<16x32xf32, #tpu.memory_space<vmem>>, vector<16x32xf32>
    %c0_1 = arith.constant 0 : index
    %c0_2 = arith.constant 0 : index
    %1 = vector.load %arg2[%c0_1, %c0_2] : memref<16x32xf32, #tpu.memory_space<vmem>>, vector<16x32xf32>
    %c0_3 = arith.constant 0 : index
    %c0_4 = arith.constant 0 : index
    %2 = vector.load %arg3[%c0_3, %c0_4] : memref<32x32xf32, #tpu.memory_space<vmem>>, vector<32x32xf32>
    %cst = arith.constant dense<0.000000e+00> : vector<16x32xf32>
    %3 = tpu.matmul %0, %2, %cst {dimension_numbers = #tpu.dot_dimension_numbers<[1], [0], [0], [1], [0, 0, 1, 1], [], []>} : vector<16x32xf32>, vector<32x32xf32>, vector<16x32xf32> -> vector<16x32xf32>
    %c0_5 = arith.constant 0 : index
    %c0_6 = arith.constant 0 : index
    %4 = vector.load %arg4[%c0_5, %c0_6] : memref<1x32xf32, #tpu.memory_space<vmem>>, vector<1x32xf32>
    %5 = vector.broadcast %4 : vector<1x32xf32> to vector<16x32xf32>
    %6 = arith.addf %3, %5 : vector<16x32xf32>
    %c0_7 = arith.constant 0 : index
    %c0_8 = arith.constant 0 : index
    %7 = vector.load %arg5[%c0_7, %c0_8] : memref<32x32xf32, #tpu.memory_space<vmem>>, vector<32x32xf32>
    %cst_9 = arith.constant dense<0.000000e+00> : vector<16x32xf32>
    %8 = tpu.matmul %0, %7, %cst_9 {dimension_numbers = #tpu.dot_dimension_numbers<[1], [0], [0], [1], [0, 0, 1, 1], [], []>} : vector<16x32xf32>, vector<32x32xf32>, vector<16x32xf32> -> vector<16x32xf32>
    %c0_10 = arith.constant 0 : index
    %c0_11 = arith.constant 0 : index
    %9 = vector.load %arg6[%c0_10, %c0_11] : memref<1x32xf32, #tpu.memory_space<vmem>>, vector<1x32xf32>
    %10 = vector.broadcast %9 : vector<1x32xf32> to vector<16x32xf32>
    %11 = arith.addf %8, %10 : vector<16x32xf32>
    %12 = math.exp %11 : vector<16x32xf32>
    %13 = arith.mulf %6, %6 : vector<16x32xf32>
    %14 = arith.addf %12, %13 : vector<16x32xf32>
    %cst_12 = arith.constant 1.000000e+00 : f32
    %15 = vector.broadcast %cst_12 : f32 to vector<16x32xf32>
    %16 = arith.subf %14, %15 : vector<16x32xf32>
    %17 = arith.subf %16, %11 : vector<16x32xf32>
    %cst_13 = arith.constant dense<0.000000e+00> : vector<16xf32>
    %18 = vector.multi_reduction <add>, %17, %cst_13 [1] : vector<16x32xf32> to vector<16xf32>
    %19 = vector.shape_cast %18 : vector<16xf32> to vector<16x1xf32>
    %cst_14 = arith.constant 5.000000e-01 : f32
    %20 = vector.broadcast %cst_14 : f32 to vector<16x1xf32>
    %21 = arith.mulf %20, %19 : vector<16x1xf32>
    %c0_15 = arith.constant 0 : index
    %c0_16 = arith.constant 0 : index
    %22 = vector.load %arg10[%c0_15, %c0_16] : memref<16x1xf32, #tpu.memory_space<vmem>>, vector<16x1xf32>
    tpu.vector_store %arg10[%c0_15, %c0_16], %21 {strides = array<i32>} : memref<16x1xf32, #tpu.memory_space<vmem>>, vector<16x1xf32>,
    %cst_17 = arith.constant 5.000000e-01 : f32
    %23 = vector.broadcast %cst_17 : f32 to vector<16x32xf32>
    %24 = arith.mulf %23, %11 : vector<16x32xf32>
    %25 = math.exp %24 : vector<16x32xf32>
    %26 = arith.mulf %1, %25 : vector<16x32xf32>
    %27 = arith.addf %6, %26 : vector<16x32xf32>
    %c0_18 = arith.constant 0 : index
    %c0_19 = arith.constant 0 : index
    %28 = vector.load %arg7[%c0_18, %c0_19] : memref<32x16xf32, #tpu.memory_space<vmem>>, vector<32x16xf32>
    %cst_20 = arith.constant dense<0.000000e+00> : vector<16x16xf32>
    %29 = tpu.matmul %27, %28, %cst_20 {dimension_numbers = #tpu.dot_dimension_numbers<[1], [0], [0], [1], [0, 0, 1, 1], [], []>} : vector<16x32xf32>, vector<32x16xf32>, vector<16x16xf32> -> vector<16x16xf32>
    %c0_21 = arith.constant 0 : index
    %c0_22 = arith.constant 0 : index
    %30 = vector.load %arg8[%c0_21, %c0_22] : memref<1x16xf32, #tpu.memory_space<vmem>>, vector<1x16xf32>
    %31 = vector.broadcast %30 : vector<1x16xf32> to vector<16x16xf32>
    %32 = arith.addf %29, %31 : vector<16x16xf32>
    %cst_23 = arith.constant dense<0xFF800000> : vector<16xf32>
    %33 = vector.multi_reduction <maximumf>, %32, %cst_23 [1] : vector<16x16xf32> to vector<16xf32>
    %34 = vector.shape_cast %33 : vector<16xf32> to vector<16x1xf32>
    %35 = vector.broadcast %34 : vector<16x1xf32> to vector<16x16xf32>
    %36 = arith.subf %32, %35 : vector<16x16xf32>
    %37 = math.exp %36 : vector<16x16xf32>
    %cst_24 = arith.constant dense<0.000000e+00> : vector<16xf32>
    %38 = vector.multi_reduction <add>, %37, %cst_24 [1] : vector<16x16xf32> to vector<16xf32>
    %39 = vector.shape_cast %38 : vector<16xf32> to vector<16x1xf32>
    %40 = math.log %39 : vector<16x1xf32>
    %41 = vector.broadcast %40 : vector<16x1xf32> to vector<16x16xf32>
    %42 = arith.subf %36, %41 : vector<16x16xf32>
    %c0_25 = arith.constant 0 : index
    %c0_26 = arith.constant 0 : index
    %43 = vector.load %arg9[%c0_25, %c0_26] : memref<16x16xf32, #tpu.memory_space<vmem>>, vector<16x16xf32>
    tpu.vector_store %arg9[%c0_25, %c0_26], %42 {strides = array<i32>} : memref<16x16xf32, #tpu.memory_space<vmem>>, vector<16x16xf32>,
    return
  }
  func.func @transform_0(%arg0: i32) -> (i32, i32) {
    %c0_i32 = arith.constant 0 : i32
    %c0_i32_0 = arith.constant 0 : i32
    return %arg0, %c0_i32 : i32, i32
  }
  func.func @transform_1(%arg0: i32) -> (i32, i32) {
    %c0_i32 = arith.constant 0 : i32
    %c0_i32_0 = arith.constant 0 : i32
    return %arg0, %c0_i32 : i32, i32
  }
  func.func @transform_2(%arg0: i32) -> (i32, i32) {
    %c0_i32 = arith.constant 0 : i32
    %c0_i32_0 = arith.constant 0 : i32
    %c0_i32_1 = arith.constant 0 : i32
    return %c0_i32, %c0_i32_0 : i32, i32
  }
  func.func @transform_3(%arg0: i32) -> (i32, i32) {
    %c0_i32 = arith.constant 0 : i32
    %c0_i32_0 = arith.constant 0 : i32
    %c0_i32_1 = arith.constant 0 : i32
    return %c0_i32, %c0_i32_0 : i32, i32
  }
  func.func @transform_4(%arg0: i32) -> (i32, i32) {
    %c0_i32 = arith.constant 0 : i32
    %c0_i32_0 = arith.constant 0 : i32
    %c0_i32_1 = arith.constant 0 : i32
    return %c0_i32, %c0_i32_0 : i32, i32
  }
  func.func @transform_5(%arg0: i32) -> (i32, i32) {
    %c0_i32 = arith.constant 0 : i32
    %c0_i32_0 = arith.constant 0 : i32
    %c0_i32_1 = arith.constant 0 : i32
    return %c0_i32, %c0_i32_0 : i32, i32
  }
  func.func @transform_6(%arg0: i32) -> (i32, i32) {
    %c0_i32 = arith.constant 0 : i32
    %c0_i32_0 = arith.constant 0 : i32
    %c0_i32_1 = arith.constant 0 : i32
    return %c0_i32, %c0_i32_0 : i32, i32
  }
  func.func @transform_7(%arg0: i32) -> (i32, i32) {
    %c0_i32 = arith.constant 0 : i32
    %c0_i32_0 = arith.constant 0 : i32
    %c0_i32_1 = arith.constant 0 : i32
    return %c0_i32, %c0_i32_0 : i32, i32
  }
  func.func @transform_8(%arg0: i32) -> (i32, i32) {
    %c0_i32 = arith.constant 0 : i32
    %c0_i32_0 = arith.constant 0 : i32
    return %arg0, %c0_i32 : i32, i32
  }
  func.func @transform_9(%arg0: i32) -> (i32, i32) {
    %c0_i32 = arith.constant 0 : i32
    %c0_i32_0 = arith.constant 0 : i32
    return %arg0, %c0_i32 : i32, i32
  }
}

</mosaic_0001>

<bundles_post_ra>
// kernel: tpu_custom_call.1
= control target key start
LH: loop header
LB: loop body
LE: loop exit
PB: predicated region body
PF: predicated region fallthrough
CT: control target
= control target key end

     0   :  { %15 = vsyncpa [#allocation3], 0  ;;  %s705_s0 = inlined_call_operand.vmem [shape: f32[16,32], index: 0, kind: input, shape index: {}]   ;;  %s706_s1 = inlined_call_operand.hbm [shape: f32[16,32], index: 1, kind: input, shape index: {}]   ;;  %s707_s2 = inlined_call_operand.vmem [shape: f32[32,32], index: 2, kind: input, shape index: {}]   ;;  %s708_s3 = inlined_call_operand.vmem [shape: f32[1,32], index: 3, kind: input, shape index: {}]   ;;  %s709_s4 = inlined_call_operand.hbm [shape: f32[32,32], index: 4, kind: input, shape index: {}]   ;;  %s710_s5 = inlined_call_operand.vmem [shape: f32[1,32], index: 5, kind: input, shape index: {}]   ;;  %s711_s6 = inlined_call_operand.vmem [shape: f32[32,16], index: 6, kind: input, shape index: {}]   ;;  %s712_s7 = inlined_call_operand.vmem [shape: f32[1,16], index: 7, kind: input, shape index: {}]   ;;  %s713_s8 = inlined_call_operand.hbm [shape: f32[16,16], index: 8, kind: output, shape index: {0}]   ;;  %s714_s9 = inlined_call_operand.vmem [shape: f32[16,1], index: 9, kind: output, shape index: {1}]  }
   0x1   :  { %16 = vsyncpa [#allocation6], 0 }
   0x2   :  { %17 = vsyncpa [#allocation4], 0  ;;  %s566_s30 = smov [#allocation2]  }
   0x3   :  { %s25_s10 = sshll.u32 %s566_s30, 4  ;;  %s26_s10 = int_to_ptr.vmem [resolvable:$true] %s25_s10 }
   0x4   :  { %s508_s11 = scalar_lea.vmem %s26_s10, 256  ;;  %p513_p1 = scmp.lt.s32.totalorder %s26_s10, %s26_s10 }
   0x5   :  { %p509_p0 = scmp.ne.s32.totalorder %s26_s10, %s508_s11  ;;  %p514_p2 = scmp.lt.s32.totalorder %s508_s11, %s508_s11 }
   0x7   :  { %p515_p3 = por %p514_p2, %p513_p1 }
   0x9   :  { %p516_p4 = pnand %p515_p3, %p509_p0 }
   0xb   :  { %519 = shalt.err (!%p516_p4)
}
   0xc   :  { %s567_s12 = smov 128   ;;  %s568_s13 = smov 8  }
   0xd   :  { %31 = dma.hbm_to_vmem [thread:$0]  %s706_s1, 256, %s26_s10, [#allocation3], %s567_s12, %s567_s12, %s568_s13  }
   0xe   :  { %s569_s16 = smov [#allocation5]  }
   0xf   :  { %s41_s17 = sshll.u32 %s569_s16, 4  ;;  %s42_s17 = int_to_ptr.vmem [resolvable:$true] %s41_s17 }
  0x10   :  { %s528_s18 = scalar_lea.vmem %s42_s17, 512  ;;  %p533_p6 = scmp.lt.s32.totalorder %s42_s17, %s42_s17 }
  0x11   :  { %p529_p5 = scmp.ne.s32.totalorder %s42_s17, %s528_s18  ;;  %p534_p7 = scmp.lt.s32.totalorder %s528_s18, %s528_s18 }
  0x13   :  { %p535_p8 = por %p534_p7, %p533_p6 }
  0x15   :  { %p536_p9 = pnand %p535_p8, %p529_p5 }
  0x17   :  { %539 = shalt.err (!%p536_p9)
}
  0x18   :  { %47 = dma.hbm_to_vmem [thread:$0]  %s709_s4, 512, %s42_s17, [#allocation6], %s567_s12, %s567_s12, %s568_s13  }
  0x19   :  { %560 = dma.done.wait [#allocation3], 256  }
  0x1a   :  { %561 = vsyncadd [#allocation3], 4294967040 }
  0x1b   :  { %562 = dma.done.wait [#allocation6], 512  }
  0x1c   :  { %563 = vsyncadd [#allocation6], 4294966784  ;;  %vm75_vm0 = vcmask 261120   ;;  %v160_v0 = vld [vmem:[#allocation5 + $0x18] sm:$0xff]  ;;  %v159_v1 = vld [vmem:[#allocation5 + $0x10] sm:$0xff]  ;;  %vm368_vm1 = vcmask 130048  }
  0x1d   :  { %457 = vmatprep.subr.mxu1 %v160_v0  ;;  %v60_v2 = vld [vmem:[%s705_s0] sm:$0xff]  ;;  %v158_v3 = vld [vmem:[#allocation5 + $0x8] sm:$0xff]  ;;  %v66_v5 = vld [vmem:[%s707_s2 + $0x10] sm:$0xff]  ;;  %vm263_vm2 = vcmask 7168   ;;  %s570_s23 = smov [#allocation7]  }
  0x1e   :  { %458 = vmatpush3.msra.mxu1 %v160_v0  ;;  %465 = vmatprep.mubr.msk.f32.mxu1 %vm75_vm0, %v60_v2  ;;  %v67_v4 = vld [vmem:[%s707_s2 + $0x18] sm:$0xff]  ;;  %v157_v6 = vld [vmem:[#allocation5] sm:$0xff]  ;;  %v65_v7 = vld [vmem:[%s707_s2 + $0x8] sm:$0xff]  ;;  %s400_s4 = sshll.u32 %s570_s23, 4  ;;  %s401_s4 = int_to_ptr.vmem [resolvable:$true] %s400_s4 }
  0x1f   :  { %459 = vmatprep.subr.mxu1 %v159_v1  ;;  %446 = vmatprep.subr.mxu0 %v67_v4  ;;  %v61_v8 = vld [vmem:[%s705_s0 + $0x8] sm:$0xff]  ;;  %v64_v9 = vld [vmem:[%s707_s2] sm:$0xff]  ;;  %v279_v10 = vld [vmem:[%s711_s6 + $0x18] sm:$0xff]  ;;  %s540_s24 = scalar_lea.vmem %s401_s4, 256  ;;  %p545_p11 = scmp.lt.s32.totalorder %s401_s4, %s401_s4 }
  0x20   :  { %460 = vmatpush3.msra.mxu1 %v159_v1  ;;  %447 = vmatpush3.msra.mxu0 %v67_v4  ;;  %v278_v11 = vld [vmem:[%s711_s6 + $0x10] sm:$0xff]  ;;  %v277_v12 = vld [vmem:[%s711_s6 + $0x8] sm:$0xff]  ;;  %v276_v13 = vld [vmem:[%s711_s6] sm:$0xff]  ;;  %p541_p10 = scmp.ne.s32.totalorder %s401_s4, %s540_s24  ;;  %p546_p12 = scmp.lt.s32.totalorder %s540_s24, %s540_s24 }
  0x21   :  { %461 = vmatprep.subr.mxu1 %v158_v3  ;;  %448 = vmatprep.subr.mxu0 %v66_v5  ;;  %v420_v14 = vld [vmem:[%s710_s5] ss:$0 sm:$0xff]  ;;  %v63_v33 = vld [vmem:[#allocation2 + $0x8] sm:$0xff] }
  0x22   :  { %462 = vmatpush3.msra.mxu1 %v158_v3  ;;  %449 = vmatpush3.msra.mxu0 %v66_v5  ;;  %v417_v26 = vld [vmem:[%s708_s3] ss:$0 sm:$0xff]  ;;  %p547_p13 = por %p546_p12, %p545_p11 }
  0x23   :  { %463 = vmatprep.subr.mxu1 %v157_v6  ;;  %450 = vmatprep.subr.mxu0 %v65_v7  ;;  %v62_v36 = vld [vmem:[#allocation2] sm:$0xff] }
  0x24   :  { %464 = vmatpush3.msra.mxu1 %v157_v6  ;;  %451 = vmatpush3.msra.mxu0 %v65_v7  ;;  %v425_v49 = vld [vmem:[%s712_s7] ss:$0 sm:$0xff]  ;;  %p548_p0 = pnand %p547_p13, %p541_p10 }
  0x25   :  { %466 = vmatmul.mubr.msk.f32.vlgmr.msra.gmra.mxu1 %vm75_vm0, %v61_v8  ;;  %452 = vmatprep.subr.mxu0 %v64_v9 }
  0x26   :  { %453 = vmatpush3.msra.mxu0 %v64_v9  ;;  %454 = vmatprep.mubr.msk.f32.mxu0 %vm75_vm0, %v60_v2 }
  0x27   :  { %455 = vmatmul.mubr.msk.f32.vlgmr.msra.gmra.mxu0 %vm75_vm0, %v61_v8  ;;  %468 = vmatprep.subr.mxu0 %v279_v10 }
  0x28   :  { %469 = vmatpush3.msra.mxu0 %v279_v10 }
  0x29   :  { %470 = vmatprep.subr.mxu0 %v278_v11 }
  0x2a   :  { %471 = vmatpush3.msra.mxu0 %v278_v11 }
  0x2b   :  { %472 = vmatprep.subr.mxu0 %v277_v12 }
  0x2c   :  { %473 = vmatpush3.msra.mxu0 %v277_v12 }
  0x2d   :  { %474 = vmatprep.subr.mxu0 %v276_v13 }
  0x2e   :  { %475 = vmatpush3.msra.mxu0 %v276_v13 }
  0xe5   :  { %v467_v15 = vpop.f32.mrf.mxu1 }
  0xe6   :  { %v670_v16 = vadd.f32 %v467_v15, %v420_v14 }
  0xe7   :  { %v234_v17 = vpop.f32.mrf.mxu1  ;;  %v456_v25 = vpop.f32.mrf.mxu0 }
  0xe8   :  { %v245_v18 = vmul.f32 1.442695, %v670_v16  ;;  %v267_v19 = vmul.f32 0.5, %v670_v16  ;;  %v235_v20 = vadd.f32 %v420_v14, %v234_v17  ;;  %v154_v27 = vadd.f32 %v456_v25, %v417_v26 }
  0xe9   :  { %v148_v28 = vpop.f32.mrf.mxu0 }
  0xea   :  { %484 = vpow2.f32 %v245_v18  ;;  %v270_v21 = vmul.f32 1.442695, %v267_v19  ;;  %v243_v22 = vmul.f32 1.442695, %v235_v20  ;;  %v266_v23 = vmul.f32 0.5, %v235_v20 }
  0xeb   :  { %v149_v29 = vadd.f32 %v417_v26, %v148_v28  ;;  %v248_v30 = vmul.f32 %v154_v27, %v154_v27 }
  0xec   :  { %486 = vpow2.f32 %v270_v21  ;;  %v268_v24 = vmul.f32 1.442695, %v266_v23 }
  0xed   :  { %488 = vpow2.f32 %v243_v22  ;;  %v247_v32 = vmul.f32 %v149_v29, %v149_v29 }
  0xee   :  { %490 = vpow2.f32 %v268_v24 }
  0xf7   :  { %v485_v31 = vpop.eup %484 }
  0xf8   :  { %v250_v34 = vadd.f32 %v485_v31, %v248_v30 }
  0xf9   :  { %v487_v35 = vpop.eup %486 }
  0xfa   :  { %v489_v37 = vpop.eup %488  ;;  %v424_v38 = vadd.f32 -1.0, %v250_v34  ;;  %v273_v40 = vmul.f32 %v487_v35, %v63_v33 }
  0xfb   :  { %v491_v39 = vpop.eup %490  ;;  %v249_v41 = vadd.f32 %v489_v37, %v247_v32 }
  0xfc   :  { %v272_v42 = vmul.f32 %v491_v39, %v62_v36  ;;  %v254_v43 = vsub.f32 %v424_v38, %v670_v16  ;;  %v275_v46 = vadd.f32 %v273_v40, %v154_v27 }
  0xfd   :  { %v423_v44 = vadd.f32 -1.0, %v249_v41 }
  0xfe   :  { %v274_v45 = vadd.f32 %v272_v42, %v149_v29  ;;  %v258_v4 = vsel %vm75_vm0, %v254_v43, 0.0 }
  0xff   :  { %v253_v47 = vsub.f32 %v423_v44, %v235_v20 }
 0x100   :  { %476 = vmatprep.mubr.msk.f32.mxu0 %vm75_vm0, %v274_v45 }
 0x101   :  { %477 = vmatmul.mubr.msk.f32.vlgmr.msra.gmra.mxu0 %vm75_vm0, %v275_v46  ;;  %v255_v55 = vsel %vm75_vm0, %v253_v47, 0.0 }
 0x1c1   :  { %v478_v48 = vpop.f32.mrf.mxu0 }
 0x1c2   :  { %v365_v52 = vadd.f32 %v478_v48, %v425_v49 }
 0x1c3   :  { %v359_v50 = vpop.f32.mrf.mxu0 }
 0x1c4   :  { %v360_v51 = vadd.f32 %v425_v49, %v359_v50  ;;  %v372_v54 = vsel %vm368_vm1, %v365_v52, -inf }
 0x1c6   :  { %v369_v53 = vsel %vm368_vm1, %v360_v51, -inf }
 0x1c7   :  { %370 = vmax.xlane.f32.xlu0 %v369_v53 }
 0x1cb   :  { %373 = vmax.xlane.f32.xlu0 %v372_v54 }
 0x1cf   :  { %256 = vadd.xlane.f32.xlu0 %v255_v55 }
 0x250   :  { %v371_v56 = vpop.xlane.xlu0 %370 }
 0x251   :  { %v375_v57 = vsub.f32 %v360_v51, %v371_v56 }
 0x253   :  { %v377_v58 = vmul.f32 1.442695, %v375_v57 }
 0x254   :  { %v374_v59 = vpop.xlane.xlu0 %373 }
 0x255   :  { %492 = vpow2.f32 %v377_v58  ;;  %v376_v60 = vsub.f32 %v365_v52, %v374_v59 }
 0x257   :  { %v379_v61 = vmul.f32 1.442695, %v376_v60 }
 0x258   :  { %v257_v62 = vpop.xlane.xlu0 %256 }
 0x259   :  { %494 = vpow2.f32 %v379_v61  ;;  %v261_v63 = vmul.f32 0.5, %v257_v62 }
 0x25b   :  { %264 = vst.msk [vmem:[%s714_s9] sm:$0xff] %vm263_vm2, %v261_v63 }
 0x262   :  { %v493_v0 = vpop.eup %492 }
 0x263   :  { %v381_v1 = vsel %vm368_vm1, %v493_v0, 0.0 }
 0x264   :  { %382 = vadd.xlane.f32.xlu1 %v381_v1 }
 0x266   :  { %v495_v2 = vpop.eup %494 }
 0x267   :  { %v384_v3 = vsel %vm368_vm1, %v495_v2, 0.0 }
 0x268   :  { %385 = vadd.xlane.f32.xlu1 %v384_v3 }
 0x26c   :  { %259 = vadd.xlane.f32.xlu1 %v258_v4 }
 0x2ed   :  { %v383_v5 = vpop.xlane.xlu1 %382 }
 0x2ee   :  { %496 = vlog2.f32 %v383_v5 }
 0x2f1   :  { %v386_v6 = vpop.xlane.xlu1 %385 }
 0x2f2   :  { %498 = vlog2.f32 %v386_v6 }
 0x2f5   :  { %v260_v7 = vpop.xlane.xlu1 %259 }
 0x2f6   :  { %v262_v8 = vmul.f32 0.5, %v260_v7 }
 0x2f8   :  { %265 = vst.msk [vmem:[%s714_s9 + $0x8] sm:$0xff] %vm263_vm2, %v262_v8 }
 0x2fb   :  { %v497_v9 = vpop.eup %496 }
 0x2fc   :  { %v388_v10 = vmul.f32 0.6931472, %v497_v9 }
 0x2fe   :  { %v391_v11 = vsub.f32 %v375_v57, %v388_v10 }
 0x2ff   :  { %v499_v12 = vpop.eup %498 }
 0x300   :  { %393 = vst.msk [vmem:[#allocation7] sm:$0xff] %vm368_vm1, %v391_v11  ;;  %v390_v13 = vmul.f32 0.6931472, %v499_v12 }
 0x302   :  { %v392_v14 = vsub.f32 %v376_v60, %v390_v13 }
 0x304   :  { %394 = vst.msk [vmem:[#allocation7 + $0x8] sm:$0xff] %vm368_vm1, %v392_v14 }
 0x305   :  { %551 = shalt.err (!%p548_p0)
}
 0x306   :  { %406 = dma.vmem_to_hbm [thread:$0]  %s401_s4, 256, %s713_s8, [#allocation4], %s567_s12, %s567_s12, %s568_s13  }
 0x307   :  { %564 = dma.done.wait [#allocation4], 256  }
 0x308   :  { %565 = vsyncadd [#allocation4], 4294967040 }
 0x309   :  { %414 = vsyncpa [#allocation3], 1 }
 0x30a   :  { %415 = vsyncpa [#allocation6], 1 }
 0x30b   :  { %416 = vsyncpa [#allocation4], 1 }

</bundles_post_ra>
